<compile_context>
chip_gen: v5e
topology: v5e:2x2
jax: 0.10.0
libtpu: 0.0.40
codegen_flags: <defaults>
</compile_context>

<pallas_src>
import functools
from typing import NamedTuple

import jax
import jax.numpy as jnp
import numpy as np
from jax.experimental import pallas as pl
from jax.experimental.pallas import tpu as pltpu

_OUT_LANES = 128          # lane-dense NLL writeback width
_NEG_BIG = -1e30          # "minus infinity" that stays NaN-free in f32 math


def _round_up(x, m):
    return ((x + m - 1) // m) * m


def _device_defaults():
    """Per-generation tiling defaults (inner row tile, vocab chunk, super rows,
    K alignment, VMEM limit, # TensorCores to shard the row axis over)."""
    try:
        kind = jax.devices()[0].device_kind.lower()
    except Exception:
        kind = ""
    if "v5" in kind:
        return dict(tn=256, tv=2048, super_rows=2048, k_align=128,
                    vmem=96 * 1024 * 1024, cores=1)
    if "v6" in kind:
        return dict(tn=512, tv=2048, super_rows=4096, k_align=256,
                    vmem=100 * 1024 * 1024, cores=1)
    if "v7" in kind:
        # only 64 MiB physical VMEM per TC; 2 TCs share the chip
        return dict(tn=256, tv=2048, super_rows=2048, k_align=256,
                    vmem=44 * 1024 * 1024, cores=2)
    return dict(tn=256, tv=1024, super_rows=1024, k_align=128,
                vmem=32 * 1024 * 1024, cores=1)


def _fit_super_rows(tn, tv, d_pad, vmem_limit):
    """Largest super-row-tile (multiple of tn) that fits the VMEM budget."""
    # per-row bytes: hidden bf16 x2 buffers + (R,4)i32 meta x2 + 4x (R,1)f32
    # scratch (both lane-padded to 512 B/row) + (R,128)f32 out block x2
    per_row = 4 * d_pad + 2 * 512 + 4 * 512 + 2 * 4 * _OUT_LANES
    # fixed: weight+bias double buffers + ~4 full [tn,tv] f32 temporaries
    fixed = 2 * (d_pad * tv * 2 + tv * 4) + 4 * tn * tv * 4
    budget = int(vmem_limit * 0.8) - fixed
    if budget < per_row * tn:
        return tn
    return max(tn, (budget // per_row) // tn * tn)


# -----------------------------------------------------------------------------
# Parameter packing (hoisted out of the per-forward path; call once).
# -----------------------------------------------------------------------------
class PackedAdaptiveParams(NamedTuple):
    w_all: jax.Array          # [d_pad, v_tot] param_dtype, column-packed groups
    b_all: jax.Array          # [1, v_tot]     f32 (padding columns = _NEG_BIG)
    meta: jax.Array           # [4, num_chunks] i32: grp / first / last / coff
    chunk_group: np.ndarray   # [num_chunks]   host chunk -> group map
    tv: int
    d_embed: int
    d_pad: int
    cutoffs: tuple            # module self.cutoffs (ctor cutoffs + [n_token])
    n_clusters: int
    head_size: int


def pack_adaptive_params(weight, bias, cluster_weight, cluster_bias, cutoffs,
                         *, block_cols=None, k_align=None,
                         param_dtype=jnp.bfloat16):
    """Pre-pack the adaptive-softmax params into one [D_pad, Vtot] lane-dense,
    pre-transposed bf16 slab + f32 bias row + per-chunk routing metadata."""
    d = _device_defaults()
    tv = int(block_cols) if block_cols is not None else d["tv"]
    k_align = int(k_align) if k_align is not None else d["k_align"]

    n_token, d_embed = weight.shape
    d_pad = _round_up(d_embed, k_align)
    n_clusters = len(cutoffs) - 1
    c0 = cutoffs[0]
    head_size = (c0 + n_clusters) if n_clusters > 0 else n_token

    if n_clusters > 0:
        head_w = jnp.concatenate([weight[:c0], cluster_weight], axis=0)
        head_b = jnp.concatenate([bias[:c0], cluster_bias], axis=0)
    else:
        head_w, head_b = weight, bias
    cutoff_values = [0] + list(cutoffs)
    groups = [(head_w, head_b)]
    for s in range(1, n_clusters + 1):
        lo, hi = cutoff_values[s], cutoff_values[s + 1]
        groups.append((weight[lo:hi], bias[lo:hi]))

    max_group = max(int(w.shape[0]) for w, _ in groups)
    tv = min(tv, _round_up(max_group, 128))
    tv = max(_round_up(tv, 128), 128)

    w_parts, b_parts, meta_rows, chunk_group = [], [], [], []
    for gi, (w_g, b_g) in enumerate(groups):
        size = int(w_g.shape[0])
        size_pad = _round_up(size, tv)
        nck = size_pad // tv
        wt = jnp.zeros((d_pad, size_pad), param_dtype)
        wt = wt.at[:d_embed, :size].set(w_g.T.astype(param_dtype))
        bb = jnp.full((size_pad,), _NEG_BIG, jnp.float32).at[:size].set(
            b_g.astype(jnp.float32))
        w_parts.append(wt)
        b_parts.append(bb)
        for c in range(nck):
            meta_rows.append([gi, int(c == 0), int(c == nck - 1), c * tv])
            chunk_group.append(gi)

    w_all = jnp.concatenate(w_parts, axis=1)              # [d_pad, v_tot]
    b_all = jnp.concatenate(b_parts)[None, :]              # [1, v_tot] f32
    meta = jnp.asarray(meta_rows, jnp.int32).T              # [4, num_chunks]
    return PackedAdaptiveParams(
        w_all, b_all, meta, np.asarray(chunk_group, np.int64),
        int(tv), int(d_embed), int(d_pad),
        tuple(int(c) for c in cutoffs), int(n_clusters), int(head_size))


# -----------------------------------------------------------------------------
# Kernel
# -----------------------------------------------------------------------------
def _adaptive_nll_kernel(meta_ref, fetch_ref,                 # SMEM (prefetch)
                         h_ref, rows_ref, w_ref, b_ref,       # VMEM inputs
                         out_ref,                             # VMEM output
                         m_ref, l_ref, g_ref, acc_ref,        # VMEM scratch
                         *, tn, n_sub, num_chunks):
    i = pl.program_id(0)          # super row tile
    j = pl.program_id(1)          # vocab chunk (reduction axis)

    grp = meta_ref[0, j]          # softmax group of this chunk (0 = head)
    first = meta_ref[1, j]        # 1 if first chunk of its group
    last = meta_ref[2, j]         # 1 if last chunk of its group
    coff = meta_ref[3, j]         # column offset of this chunk inside its group
    # chunk is active for this super tile iff its weight block was (re)fetched
    is_active = fetch_ref[i * num_chunks + j] == j

    # New super tile -> reset the NLL accumulator.
    @pl.when(j == 0)
    def _():
        acc_ref[...] = jnp.zeros(acc_ref.shape, acc_ref.dtype)

    @pl.when(is_active)
    def _():
        # New softmax group -> reset online-logsumexp state.
        @pl.when(first == 1)
        def _():
            m_ref[...] = jnp.full(m_ref.shape, _NEG_BIG, m_ref.dtype)
            l_ref[...] = jnp.zeros(l_ref.shape, l_ref.dtype)
            g_ref[...] = jnp.zeros(g_ref.shape, g_ref.dtype)

        hflag = (grp == 0).astype(jnp.int32)        # scalar: 1 for head group

        # Stream the resident hidden super tile through the MXU sub-tile by
        # sub-tile against this weight chunk (weights are read from HBM only
        # once per super tile).
        @pl.loop(0, n_sub)
        def _(r):
            r0 = pl.multiple_of(r * tn, tn)
            rs = pl.ds(r0, tn)

            logits = jnp.dot(h_ref[rs, :], w_ref[...],
                             preferred_element_type=jnp.float32) + b_ref[...]

            rm = rows_ref[rs, :]                    # [tn, 4] i32
            hcol_v = rm[:, 0:1]                     # target col in the head
            seg_v = rm[:, 1:2]                      # segment id
            trel_v = rm[:, 2:3]                     # target col inside its tail

            # ---- online logsumexp over this group's chunks (flash style) ----
            m_old = m_ref[rs, :]
            m_new = jnp.maximum(m_old, jnp.max(logits, axis=1, keepdims=True))
            l_ref[rs, :] = (l_ref[rs, :] * jnp.exp(m_old - m_new)
                            + jnp.sum(jnp.exp(logits - m_new),
                                      axis=1, keepdims=True))
            m_ref[rs, :] = m_new

            # ---- gather the RAW logit of each row's wanted column ----------
            want = hflag * hcol_v + (1 - hflag) * trel_v          # [tn,1]
            cmp_to = grp * (1 - hflag) + seg_v * hflag            # == seg_v @head
            active = seg_v == cmp_to                              # [tn,1] bool
            want_eff = jnp.where(active, want - coff, -1)         # [tn,1]
            cols = jax.lax.broadcasted_iota(jnp.int32, logits.shape, 1)
            g_ref[rs, :] += jnp.sum(jnp.where(cols == want_eff, logits, 0.0),
                                    axis=1, keepdims=True)

        # ---- end of a group: fold its log-prob contribution into the NLL ----
        @pl.when(last == 1)
        def _():
            seg_all = rows_ref[...][:, 1:2]
            cmp_all = grp * (1 - hflag) + seg_all * hflag
            active_all = seg_all == cmp_all
            lp = g_ref[...] - m_ref[...] - jnp.log(l_ref[...])
            acc_ref[...] -= jnp.where(active_all, lp, 0.0)

    # ---- last chunk overall: lane-dense writeback of this super tile's NLL --
    @pl.when(j == pl.num_programs(1) - 1)
    def _():
        out_ref[...] = jnp.broadcast_to(acc_ref[...], out_ref.shape)


# -----------------------------------------------------------------------------
# Wrapper
# -----------------------------------------------------------------------------
def adaptive_nll_from_packed(hidden, target, packed, *, keep_order=False,
                             block_rows=None, super_rows=None,
                             vmem_limit_bytes=None, param_dtype=jnp.bfloat16):
    """Forward of ProjectedAdaptiveLogSoftmax (div_val=1, d_proj==d_embed)
    using pre-packed params.  Returns per-token NLL in the module's ordering
    (keep_order=True: original order; False: segment-compacted order)."""
    N, D = hidden.shape
    assert D == packed.d_embed, "d_proj != d_embed (out_projs) not supported"

    d = _device_defaults()
    tn = int(block_rows) if block_rows is not None else d["tn"]
    tn = max(16, _round_up(min(tn, _round_up(N, 16)), 16))
    tv = packed.tv
    d_pad = packed.d_pad
    vmem_limit_bytes = (int(vmem_limit_bytes) if vmem_limit_bytes is not None
                        else d["vmem"])
    n_cores = d["cores"]

    # ---- super-row-tile size: as big as VMEM allows (weights stream once) ---
    req = int(super_rows) if super_rows is not None else d["super_rows"]
    req = max(tn, (req // tn) * tn)
    fit = _fit_super_rows(tn, tv, d_pad, vmem_limit_bytes)
    cap_n = _round_up(N, tn)
    rows_super = min(req, fit, cap_n)
    if n_cores > 1:
        # keep at least one super tile per TensorCore so the parallel row axis
        # actually shards across both v7x cores
        per_core = (cap_n // (n_cores * tn)) * tn
        if per_core >= tn:
            rows_super = min(rows_super, per_core)
    rows_super = max(tn, (rows_super // tn) * tn)
    n_pad = _round_up(N, rows_super)
    n_super = n_pad // rows_super
    n_sub = rows_super // tn

    num_chunks = int(packed.meta.shape[1])
    v_tot = int(packed.w_all.shape[1])
    n_groups = packed.n_clusters + 1
    H = packed.head_size
    cutoff_values = [0] + list(packed.cutoffs)

    # ---- per-row routing info (pure JAX glue) --------------------------------
    t = target.astype(jnp.int32)
    if packed.n_clusters > 0:
        seg_bounds = jnp.asarray(cutoff_values[1:-1], jnp.int32)
        seg = jnp.sum((t[:, None] >= seg_bounds[None, :]).astype(jnp.int32),
                      axis=1)
        lo_per_seg = jnp.asarray(cutoff_values[:-1], jnp.int32)
        hcol = jnp.where(seg == 0, t, H - seg)   # gathered column in the head
        trel = t - lo_per_seg[seg]               # gathered column in its tail
    else:
        seg = jnp.zeros_like(t)
        hcol = t
        trel = jnp.zeros_like(t)

    hidden_p = jnp.zeros((n_pad, d_pad), param_dtype).at[:N, :D].set(
        hidden.astype(param_dtype))
    rows_meta = jnp.zeros((n_pad, 4), jnp.int32)
    rows_meta = (rows_meta.at[:N, 0].set(hcol)
                          .at[:N, 1].set(seg)
                          .at[:N, 2].set(trel))

    # ---- per-(super tile, chunk) activity -> weight-fetch index table --------
    seg_pad = jnp.zeros((n_pad,), jnp.int32).at[:N].set(seg)
    seg_tiles = seg_pad.reshape(n_super, rows_super)
    act_group = jnp.any(
        seg_tiles[:, :, None]
        == jnp.arange(n_groups, dtype=jnp.int32)[None, None, :], axis=1)
    act_group = act_group.at[:, 0].set(True)     # head is needed for every row
    chunk_ids = jnp.asarray(packed.chunk_group, jnp.int32)
    act_chunk = jnp.take(act_group, chunk_ids, axis=1)        # [n_super, C]
    idx = jnp.arange(num_chunks, dtype=jnp.int32)[None, :]
    # fetch[i, j] = most recent active chunk index <= j (chunk 0 always active);
    # inactive chunks re-use the previous block index -> Pallas skips the DMA,
    # and the kernel detects "fetch != j" to skip the compute.
    fetch = jax.lax.cummax(jnp.where(act_chunk, idx, jnp.int32(0)), axis=1)
    fetch_flat = fetch.reshape(-1).astype(jnp.int32)          # [n_super * C]

    # NOTE: upper bound — assumes every chunk is computed for every super tile.
    cost = pl.CostEstimate(
        flops=2 * n_pad * d_pad * v_tot,
        transcendentals=n_pad * v_tot,
        bytes_accessed=int(
            n_super * (packed.w_all.size * packed.w_all.dtype.itemsize
                       + packed.b_all.size * 4)
            + hidden_p.size * hidden_p.dtype.itemsize
            + rows_meta.size * 4 + n_pad * _OUT_LANES * 4),
    )

    kernel = functools.partial(_adaptive_nll_kernel, tn=tn, n_sub=n_sub,
                               num_chunks=num_chunks)

    grid_spec = pltpu.PrefetchScalarGridSpec(
        num_scalar_prefetch=2,
        grid=(n_super, num_chunks),
        in_specs=[
            # hidden super tile: constant block index over j -> fetched once
            pl.BlockSpec((rows_super, d_pad), lambda i, j, m, f: (i, 0)),
            # per-row routing metadata (hcol / seg / trel / pad)
            pl.BlockSpec((rows_super, 4), lambda i, j, m, f: (i, 0)),
            # weight chunk (lane-dense, pre-transposed); inactive chunks repeat
            # the previous block index -> DMA elided
            pl.BlockSpec((d_pad, tv),
                         lambda i, j, m, f: (0, f[i * num_chunks + j])),
            # bias chunk (f32)
            pl.BlockSpec((1, tv),
                         lambda i, j, m, f: (0, f[i * num_chunks + j])),
        ],
        out_specs=pl.BlockSpec((rows_super, _OUT_LANES),
                               lambda i, j, m, f: (i, 0)),
        scratch_shapes=[pltpu.VMEM((rows_super, 1), jnp.float32),   # running max
                        pltpu.VMEM((rows_super, 1), jnp.float32),   # running sum
                        pltpu.VMEM((rows_super, 1), jnp.float32),   # gathered logit
                        pltpu.VMEM((rows_super, 1), jnp.float32)],  # NLL accum
    )

    out = pl.pallas_call(
        kernel,
        grid_spec=grid_spec,
        out_shape=jax.ShapeDtypeStruct((n_pad, _OUT_LANES), jnp.float32),
        compiler_params=pltpu.CompilerParams(
            dimension_semantics=("parallel", "arbitrary"),
            vmem_limit_bytes=int(vmem_limit_bytes)),
        cost_estimate=cost,
    )(packed.meta, fetch_flat, hidden_p, rows_meta, packed.w_all, packed.b_all)

    nll_tok = out[:N, 0]
    if keep_order:
        return nll_tok
    # keep_order=False (module default): NLL compacted segment-by-segment
    # (original order inside each segment) == stable sort by segment id.
    return nll_tok[jnp.argsort(seg, stable=True)]


def projected_adaptive_nll(hidden, target, weight, bias, cluster_weight,
                           cluster_bias, cutoffs, *, keep_order=False,
                           block_rows=None, block_cols=None, super_rows=None,
                           vmem_limit_bytes=None, param_dtype=jnp.bfloat16):
    """Convenience wrapper: packs params then runs the kernel.  For repeated
    forwards, call pack_adaptive_params() once and reuse the packed slab."""
    packed = pack_adaptive_params(weight, bias, cluster_weight, cluster_bias,
                                  cutoffs, block_cols=block_cols,
                                  param_dtype=param_dtype)
    return adaptive_nll_from_packed(hidden, target, packed,
                                    keep_order=keep_order,
                                    block_rows=block_rows,
                                    super_rows=super_rows,
                                    vmem_limit_bytes=vmem_limit_bytes,
                                    param_dtype=param_dtype)


# -----------------------------------------------------------------------------
# Pure-JAX reference (direct transcription of the PyTorch forward, div_val=1)
# -----------------------------------------------------------------------------
def reference_nll(hidden, target, weight, bias, cluster_weight, cluster_bias,
                  cutoffs, keep_order=False):
    N = hidden.shape[0]
    n_clusters = len(cutoffs) - 1
    target = target.astype(jnp.int32)
    if n_clusters == 0:
        lp = jax.nn.log_softmax(hidden @ weight.T + bias, axis=-1)
        return -lp[jnp.arange(N), target]
    c0 = cutoffs[0]
    head_w = jnp.concatenate([weight[:c0], cluster_weight], axis=0)
    head_b = jnp.concatenate([bias[:c0], cluster_bias], axis=0)
    head_lp = jax.nn.log_softmax(hidden @ head_w.T + head_b, axis=1)
    H = head_lp.shape[1]
    cutoff_values = [0] + list(cutoffs)
    rows = jnp.arange(N)
    nll_tok = jnp.zeros((N,), jnp.float32)
    seg_id = jnp.zeros((N,), jnp.int32)
    for i in range(len(cutoff_values) - 1):
        lo, hi = cutoff_values[i], cutoff_values[i + 1]
        mask = (target >= lo) & (target < hi)
        seg_id = jnp.where(mask, i, seg_id)
        if i == 0:
            lp_i = head_lp[rows, jnp.clip(target, 0, H - 1)]
        else:
            tail_lp = jax.nn.log_softmax(hidden @ weight[lo:hi].T + bias[lo:hi],
                                         axis=1)
            lp_i = head_lp[:, -i] + tail_lp[rows,
                                            jnp.clip(target - lo, 0, hi - lo - 1)]
        nll_tok = jnp.where(mask, -lp_i, nll_tok)
    if keep_order:
        return nll_tok
    return nll_tok[jnp.argsort(seg_id, stable=True)]


# -----------------------------------------------------------------------------
# Main
# -----------------------------------------------------------------------------
if __name__ == "__main__":
    # Small analog of the module configuration (real cutoffs are 20000/200000).
    d_embed = d_proj = 128          # div_val=1, d_proj == d_embed -> out_projs None
    n_token = 1000
    ctor_cutoffs = [256, 640]       # constructor `cutoffs`
    cutoffs = ctor_cutoffs + [n_token]   # == module's self.cutoffs
    n_clusters = len(cutoffs) - 1

    key = jax.random.PRNGKey(0)
    k1, k2, k3, k4, k5, k6, k7 = jax.random.split(key, 7)
    weight = jax.random.normal(k1, (n_token, d_embed), jnp.float32) * 0.05
    bias = jax.random.normal(k2, (n_token,), jnp.float32) * 0.01
    # (the module inits these to zeros; random here so the check is non-trivial)
    cluster_weight = jax.random.normal(k5, (n_clusters, d_embed), jnp.float32) * 0.05
    cluster_bias = jax.random.normal(k6, (n_clusters,), jnp.float32) * 0.01

    N = 64                          # len * bsz
    hidden = jax.random.normal(k3, (N, d_proj), jnp.float32)
    # First half: shortlist-only targets -> tail chunks inactive for super
    # tile 0 (exercises chunk skipping + weight-DMA elision).  Second half:
    # targets anywhere (exercises tail groups + keep_order reordering).
    t_lo = jax.random.randint(k4, (N // 2,), 0, cutoffs[0], jnp.int32)
    t_hi = jax.random.randint(k7, (N // 2,), 0, n_token, jnp.int32)
    target = jnp.concatenate([t_lo, t_hi])

    # Pack the weight slab ONCE (hoisted out of the per-forward path).  Small
    # tiles so the toy problem exercises multi-chunk streaming, multiple row
    # sub-tiles, multiple super tiles and the padded last chunk of each group.
    packed = pack_adaptive_params(weight, bias, cluster_weight, cluster_bias,
                                  cutoffs, block_cols=128)
    tile_kwargs = dict(block_rows=16, super_rows=32)

    nll_keep = adaptive_nll_from_packed(hidden, target, packed,
                                        keep_order=True, **tile_kwargs)
    nll_keep = jax.block_until_ready(nll_keep)
    nll_compact = adaptive_nll_from_packed(hidden, target, packed,
                                           keep_order=False, **tile_kwargs)
    nll_compact = jax.block_until_ready(nll_compact)

    # Reference on the same bf16-rounded params the kernel feeds to the MXU.
    q = lambda a: a.astype(jnp.bfloat16).astype(jnp.float32)
    ref_keep = reference_nll(q(hidden), target, q(weight), bias,
                             q(cluster_weight), cluster_bias, cutoffs,
                             keep_order=True)
    ref_compact = reference_nll(q(hidden), target, q(weight), bias,
                                q(cluster_weight), cluster_bias, cutoffs,
                                keep_order=False)

    np.testing.assert_allclose(np.asarray(nll_keep), np.asarray(ref_keep),
                               rtol=2e-3, atol=2e-3)
    np.testing.assert_allclose(np.asarray(nll_compact), np.asarray(ref_compact),
                               rtol=2e-3, atol=2e-3)
    print("KERNEL_OK")
</pallas_src>

<mosaic_0001>
module attributes {stable_mosaic.version = 11 : i64} {
  func.func @_adaptive_nll_kernel(%arg0: i32, %arg1: i32, %arg2: memref<4x9xi32, #tpu.memory_space<smem>>, %arg3: memref<18xi32, #tpu.memory_space<smem>>, %arg4: memref<32x128xbf16, #tpu.memory_space<vmem>>, %arg5: memref<32x4xi32, #tpu.memory_space<vmem>>, %arg6: memref<128x128xbf16, #tpu.memory_space<vmem>>, %arg7: memref<1x128xf32, #tpu.memory_space<vmem>>, %arg8: memref<32x128xf32, #tpu.memory_space<vmem>>, %arg9: memref<32x1xf32, #tpu.memory_space<vmem>>, %arg10: memref<32x1xf32, #tpu.memory_space<vmem>>, %arg11: memref<32x1xf32, #tpu.memory_space<vmem>>, %arg12: memref<32x1xf32, #tpu.memory_space<vmem>>) attributes {dimension_semantics = [#tpu.dimension_semantics<parallel>, #tpu.dimension_semantics<arbitrary>], iteration_bounds = array<i64: 2, 9>, scalar_prefetch = 2 : i64, scratch_operands = 4 : i64, tpu.core_type = #tpu.core_type<tc>, window_params = [{transform_indices = @transform_0, window_bounds = array<i64: 32, 128>}, {transform_indices = @transform_1, window_bounds = array<i64: 32, 4>}, {transform_indices = @transform_2, window_bounds = array<i64: 128, 128>}, {transform_indices = @transform_3, window_bounds = array<i64: 1, 128>}, {transform_indices = @transform_4, window_bounds = array<i64: 32, 128>}]} {
    %c0 = arith.constant 0 : index
    %0 = arith.index_cast %arg1 : i32 to index
    %1 = memref.load %arg2[%c0, %0] : memref<4x9xi32, #tpu.memory_space<smem>>
    %c1 = arith.constant 1 : index
    %2 = arith.index_cast %arg1 : i32 to index
    %3 = memref.load %arg2[%c1, %2] : memref<4x9xi32, #tpu.memory_space<smem>>
    %c2 = arith.constant 2 : index
    %4 = arith.index_cast %arg1 : i32 to index
    %5 = memref.load %arg2[%c2, %4] : memref<4x9xi32, #tpu.memory_space<smem>>
    %c3 = arith.constant 3 : index
    %6 = arith.index_cast %arg1 : i32 to index
    %7 = memref.load %arg2[%c3, %6] : memref<4x9xi32, #tpu.memory_space<smem>>
    %c9_i32 = arith.constant 9 : i32
    %8 = arith.muli %arg0, %c9_i32 : i32
    %9 = arith.addi %8, %arg1 : i32
    %10 = arith.index_cast %9 : i32 to index
    %11 = memref.load %arg3[%10] : memref<18xi32, #tpu.memory_space<smem>>
    %12 = arith.cmpi eq, %11, %arg1 : i32
    %c0_i32 = arith.constant 0 : i32
    %13 = arith.cmpi eq, %arg1, %c0_i32 : i32
    %14 = arith.extui %13 : i1 to i32
    %c0_i32_0 = arith.constant 0 : i32
    %15 = arith.cmpi ne, %14, %c0_i32_0 : i32
    scf.if %15 {
      %cst = arith.constant 0.000000e+00 : f32
      %21 = vector.broadcast %cst : f32 to vector<32x1xf32>
      %c0_3 = arith.constant 0 : index
      %c0_4 = arith.constant 0 : index
      %22 = vector.load %arg12[%c0_3, %c0_4] : memref<32x1xf32, #tpu.memory_space<vmem>>, vector<32x1xf32>
      tpu.vector_store %arg12[%c0_3, %c0_4], %21 {strides = array<i32>} : memref<32x1xf32, #tpu.memory_space<vmem>>, vector<32x1xf32>,
    } else {
    }
    %16 = arith.extui %12 : i1 to i32
    %c0_i32_1 = arith.constant 0 : i32
    %17 = arith.cmpi ne, %16, %c0_i32_1 : i32
    scf.if %17 {
      %c1_i32 = arith.constant 1 : i32
      %21 = arith.cmpi eq, %3, %c1_i32 : i32
      %22 = arith.extui %21 : i1 to i32
      %c0_i32_3 = arith.constant 0 : i32
      %23 = arith.cmpi ne, %22, %c0_i32_3 : i32
      scf.if %23 {
        %cst = arith.constant -1.000000e+30 : f32
        %30 = vector.broadcast %cst : f32 to vector<32x1xf32>
        %c0_10 = arith.constant 0 : index
        %c0_11 = arith.constant 0 : index
        %31 = vector.load %arg9[%c0_10, %c0_11] : memref<32x1xf32, #tpu.memory_space<vmem>>, vector<32x1xf32>
        tpu.vector_store %arg9[%c0_10, %c0_11], %30 {strides = array<i32>} : memref<32x1xf32, #tpu.memory_space<vmem>>, vector<32x1xf32>,
        %cst_12 = arith.constant 0.000000e+00 : f32
        %32 = vector.broadcast %cst_12 : f32 to vector<32x1xf32>
        %c0_13 = arith.constant 0 : index
        %c0_14 = arith.constant 0 : index
        %33 = vector.load %arg10[%c0_13, %c0_14] : memref<32x1xf32, #tpu.memory_space<vmem>>, vector<32x1xf32>
        tpu.vector_store %arg10[%c0_13, %c0_14], %32 {strides = array<i32>} : memref<32x1xf32, #tpu.memory_space<vmem>>, vector<32x1xf32>,
        %cst_15 = arith.constant 0.000000e+00 : f32
        %34 = vector.broadcast %cst_15 : f32 to vector<32x1xf32>
        %c0_16 = arith.constant 0 : index
        %c0_17 = arith.constant 0 : index
        %35 = vector.load %arg11[%c0_16, %c0_17] : memref<32x1xf32, #tpu.memory_space<vmem>>, vector<32x1xf32>
        tpu.vector_store %arg11[%c0_16, %c0_17], %34 {strides = array<i32>} : memref<32x1xf32, #tpu.memory_space<vmem>>, vector<32x1xf32>,
      } else {
      }
      %c0_i32_4 = arith.constant 0 : i32
      %24 = arith.cmpi eq, %1, %c0_i32_4 : i32
      %25 = arith.extui %24 : i1 to i32
      %c0_i32_5 = arith.constant 0 : i32
      %c2_i32 = arith.constant 2 : i32
      %26 = arith.addi %c0_i32_5, %c2_i32 : i32
      %c1_i32_6 = arith.constant 1 : i32
      scf.for %arg13 = %c0_i32_5 to %26 step %c1_i32_6  : i32 {
        %c1_i32_10 = arith.constant 1 : i32
        %30 = arith.muli %arg13, %c1_i32_10 : i32
        %c0_i32_11 = arith.constant 0 : i32
        %31 = arith.addi %c0_i32_11, %30 : i32
        %c16_i32 = arith.constant 16 : i32
        %32 = arith.muli %31, %c16_i32 : i32
        %33 = tpu.assume_multiple %32, 16 : i32
        %34 = arith.index_cast %33 : i32 to index
        %c0_12 = arith.constant 0 : index
        %35 = vector.load %arg4[%34, %c0_12] : memref<32x128xbf16, #tpu.memory_space<vmem>>, vector<16x128xbf16>
        %c0_13 = arith.constant 0 : index
        %c0_14 = arith.constant 0 : index
        %36 = vector.load %arg6[%c0_13, %c0_14] : memref<128x128xbf16, #tpu.memory_space<vmem>>, vector<128x128xbf16>
        %cst = arith.constant dense<0.000000e+00> : vector<16x128xf32>
        %37 = tpu.matmul %35, %36, %cst {dimension_numbers = #tpu.dot_dimension_numbers<[1], [0], [0], [1], [0, 0, 1, 1], [], []>} : vector<16x128xbf16>, vector<128x128xbf16>, vector<16x128xf32> -> vector<16x128xf32>
        %c0_15 = arith.constant 0 : index
        %c0_16 = arith.constant 0 : index
        %38 = vector.load %arg7[%c0_15, %c0_16] : memref<1x128xf32, #tpu.memory_space<vmem>>, vector<1x128xf32>
        %39 = vector.broadcast %38 : vector<1x128xf32> to vector<16x128xf32>
        %40 = arith.addf %37, %39 : vector<16x128xf32>
        %41 = arith.index_cast %33 : i32 to index
        %c0_17 = arith.constant 0 : index
        %42 = vector.load %arg5[%41, %c0_17] : memref<32x4xi32, #tpu.memory_space<vmem>>, vector<16x4xi32>
        %43 = vector.extract_strided_slice %42 {offsets = [0, 0], sizes = [16, 1], strides = [1, 1]} : vector<16x4xi32> to vector<16x1xi32>
        %44 = vector.extract_strided_slice %42 {offsets = [0, 1], sizes = [16, 1], strides = [1, 1]} : vector<16x4xi32> to vector<16x1xi32>
        %45 = vector.extract_strided_slice %42 {offsets = [0, 2], sizes = [16, 1], strides = [1, 1]} : vector<16x4xi32> to vector<16x1xi32>
        %46 = arith.index_cast %33 : i32 to index
        %c0_18 = arith.constant 0 : index
        %47 = vector.load %arg9[%46, %c0_18] : memref<32x1xf32, #tpu.memory_space<vmem>>, vector<16x1xf32>
        %cst_19 = arith.constant dense<0xFF800000> : vector<16xf32>
        %48 = vector.multi_reduction <maximumf>, %40, %cst_19 [1] : vector<16x128xf32> to vector<16xf32>
        %49 = vector.shape_cast %48 : vector<16xf32> to vector<16x1xf32>
        %50 = arith.maximumf %47, %49 : vector<16x1xf32>
        %51 = arith.index_cast %33 : i32 to index
        %c0_20 = arith.constant 0 : index
        %52 = vector.load %arg10[%51, %c0_20] : memref<32x1xf32, #tpu.memory_space<vmem>>, vector<16x1xf32>
        %53 = arith.subf %47, %50 : vector<16x1xf32>
        %54 = math.exp %53 : vector<16x1xf32>
        %55 = arith.mulf %52, %54 : vector<16x1xf32>
        %56 = vector.broadcast %50 : vector<16x1xf32> to vector<16x128xf32>
        %57 = arith.subf %40, %56 : vector<16x128xf32>
        %58 = math.exp %57 : vector<16x128xf32>
        %cst_21 = arith.constant dense<0.000000e+00> : vector<16xf32>
        %59 = vector.multi_reduction <add>, %58, %cst_21 [1] : vector<16x128xf32> to vector<16xf32>
        %60 = vector.shape_cast %59 : vector<16xf32> to vector<16x1xf32>
        %61 = arith.addf %55, %60 : vector<16x1xf32>
        %62 = arith.index_cast %33 : i32 to index
        %c0_22 = arith.constant 0 : index
        %63 = vector.load %arg10[%62, %c0_22] : memref<32x1xf32, #tpu.memory_space<vmem>>, vector<16x1xf32>
        tpu.vector_store %arg10[%62, %c0_22], %61 {strides = array<i32>} : memref<32x1xf32, #tpu.memory_space<vmem>>, vector<16x1xf32>,
        %64 = arith.index_cast %33 : i32 to index
        %c0_23 = arith.constant 0 : index
        %65 = vector.load %arg9[%64, %c0_23] : memref<32x1xf32, #tpu.memory_space<vmem>>, vector<16x1xf32>
        tpu.vector_store %arg9[%64, %c0_23], %50 {strides = array<i32>} : memref<32x1xf32, #tpu.memory_space<vmem>>, vector<16x1xf32>,
        %66 = vector.broadcast %25 : i32 to vector<16x1xi32>
        %67 = arith.muli %66, %43 : vector<16x1xi32>
        %c1_i32_24 = arith.constant 1 : i32
        %68 = arith.subi %c1_i32_24, %25 : i32
        %69 = vector.broadcast %68 : i32 to vector<16x1xi32>
        %70 = arith.muli %69, %45 : vector<16x1xi32>
        %71 = arith.addi %67, %70 : vector<16x1xi32>
        %c1_i32_25 = arith.constant 1 : i32
        %72 = arith.subi %c1_i32_25, %25 : i32
        %73 = arith.muli %1, %72 : i32
        %74 = vector.broadcast %25 : i32 to vector<16x1xi32>
        %75 = arith.muli %44, %74 : vector<16x1xi32>
        %76 = vector.broadcast %73 : i32 to vector<16x1xi32>
        %77 = arith.addi %76, %75 : vector<16x1xi32>
        %78 = arith.cmpi eq, %44, %77 : vector<16x1xi32>
        %79 = vector.broadcast %7 : i32 to vector<16x1xi32>
        %80 = arith.subi %71, %79 : vector<16x1xi32>
        %c-1_i32 = arith.constant -1 : i32
        %81 = vector.broadcast %c-1_i32 : i32 to vector<16x1xi32>
        %82 = arith.select %78, %80, %81 : vector<16x1xi1>, vector<16x1xi32>
        %83 = tpu.iota {dimensions = array<i32: 1>} : vector<16x128xi32>
        %84 = arith.index_cast %33 : i32 to index
        %c0_26 = arith.constant 0 : index
        %85 = vector.load %arg11[%84, %c0_26] : memref<32x1xf32, #tpu.memory_space<vmem>>, vector<16x1xf32>
        %86 = vector.broadcast %82 : vector<16x1xi32> to vector<16x128xi32>
        %87 = arith.cmpi eq, %83, %86 : vector<16x128xi32>
        %cst_27 = arith.constant 0.000000e+00 : f32
        %88 = vector.broadcast %cst_27 : f32 to vector<16x128xf32>
        %89 = arith.select %87, %40, %88 : vector<16x128xi1>, vector<16x128xf32>
        %cst_28 = arith.constant dense<0.000000e+00> : vector<16xf32>
        %90 = vector.multi_reduction <add>, %89, %cst_28 [1] : vector<16x128xf32> to vector<16xf32>
        %91 = vector.shape_cast %90 : vector<16xf32> to vector<16x1xf32>
        %92 = arith.addf %85, %91 : vector<16x1xf32>
        %93 = arith.index_cast %33 : i32 to index
        %c0_29 = arith.constant 0 : index
        %94 = vector.load %arg11[%93, %c0_29] : memref<32x1xf32, #tpu.memory_space<vmem>>, vector<16x1xf32>
        tpu.vector_store %arg11[%93, %c0_29], %92 {strides = array<i32>} : memref<32x1xf32, #tpu.memory_space<vmem>>, vector<16x1xf32>,
      }
      %c2_i32_7 = arith.constant 2 : i32
      %c1_i32_8 = arith.constant 1 : i32
      %27 = arith.cmpi eq, %5, %c1_i32_8 : i32
      %28 = arith.extui %27 : i1 to i32
      %c0_i32_9 = arith.constant 0 : i32
      %29 = arith.cmpi ne, %28, %c0_i32_9 : i32
      scf.if %29 {
        %c0_10 = arith.constant 0 : index
        %c0_11 = arith.constant 0 : index
        %30 = vector.load %arg5[%c0_10, %c0_11] : memref<32x4xi32, #tpu.memory_space<vmem>>, vector<32x4xi32>
        %31 = vector.extract_strided_slice %30 {offsets = [0, 1], sizes = [32, 1], strides = [1, 1]} : vector<32x4xi32> to vector<32x1xi32>
        %c1_i32_12 = arith.constant 1 : i32
        %32 = arith.subi %c1_i32_12, %25 : i32
        %33 = arith.muli %1, %32 : i32
        %34 = vector.broadcast %25 : i32 to vector<32x1xi32>
        %35 = arith.muli %31, %34 : vector<32x1xi32>
        %36 = vector.broadcast %33 : i32 to vector<32x1xi32>
        %37 = arith.addi %36, %35 : vector<32x1xi32>
        %38 = arith.cmpi eq, %31, %37 : vector<32x1xi32>
        %c0_13 = arith.constant 0 : index
        %c0_14 = arith.constant 0 : index
        %39 = vector.load %arg11[%c0_13, %c0_14] : memref<32x1xf32, #tpu.memory_space<vmem>>, vector<32x1xf32>
        %c0_15 = arith.constant 0 : index
        %c0_16 = arith.constant 0 : index
        %40 = vector.load %arg9[%c0_15, %c0_16] : memref<32x1xf32, #tpu.memory_space<vmem>>, vector<32x1xf32>
        %41 = arith.subf %39, %40 : vector<32x1xf32>
        %c0_17 = arith.constant 0 : index
        %c0_18 = arith.constant 0 : index
        %42 = vector.load %arg10[%c0_17, %c0_18] : memref<32x1xf32, #tpu.memory_space<vmem>>, vector<32x1xf32>
        %43 = math.log %42 : vector<32x1xf32>
        %44 = arith.subf %41, %43 : vector<32x1xf32>
        %c0_19 = arith.constant 0 : index
        %c0_20 = arith.constant 0 : index
        %45 = vector.load %arg12[%c0_19, %c0_20] : memref<32x1xf32, #tpu.memory_space<vmem>>, vector<32x1xf32>
        %cst = arith.constant 0.000000e+00 : f32
        %46 = vector.broadcast %cst : f32 to vector<32x1xf32>
        %47 = arith.select %38, %44, %46 : vector<32x1xi1>, vector<32x1xf32>
        %48 = arith.subf %45, %47 : vector<32x1xf32>
        %c0_21 = arith.constant 0 : index
        %c0_22 = arith.constant 0 : index
        %49 = vector.load %arg12[%c0_21, %c0_22] : memref<32x1xf32, #tpu.memory_space<vmem>>, vector<32x1xf32>
        tpu.vector_store %arg12[%c0_21, %c0_22], %48 {strides = array<i32>} : memref<32x1xf32, #tpu.memory_space<vmem>>, vector<32x1xf32>,
      } else {
      }
    } else {
    }
    %c8_i32 = arith.constant 8 : i32
    %18 = arith.cmpi eq, %arg1, %c8_i32 : i32
    %19 = arith.extui %18 : i1 to i32
    %c0_i32_2 = arith.constant 0 : i32
    %20 = arith.cmpi ne, %19, %c0_i32_2 : i32
    scf.if %20 {
      %c0_3 = arith.constant 0 : index
      %c0_4 = arith.constant 0 : index
      %21 = vector.load %arg12[%c0_3, %c0_4] : memref<32x1xf32, #tpu.memory_space<vmem>>, vector<32x1xf32>
      %22 = vector.shape_cast %21 : vector<32x1xf32> to vector<32x1xf32>
      %23 = vector.broadcast %22 : vector<32x1xf32> to vector<32x128xf32>
      %c0_5 = arith.constant 0 : index
      %c0_6 = arith.constant 0 : index
      %24 = vector.load %arg8[%c0_5, %c0_6] : memref<32x128xf32, #tpu.memory_space<vmem>>, vector<32x128xf32>
      tpu.vector_store %arg8[%c0_5, %c0_6], %23 {strides = array<i32>} : memref<32x128xf32, #tpu.memory_space<vmem>>, vector<32x128xf32>,
    } else {
    }
    return
  }
  func.func @transform_0(%arg0: i32, %arg1: i32, %arg2: memref<4x9xi32, #tpu.memory_space<smem>>, %arg3: memref<18xi32, #tpu.memory_space<smem>>) -> (i32, i32) {
    %c0_i32 = arith.constant 0 : i32
    %c0_i32_0 = arith.constant 0 : i32
    return %arg0, %c0_i32 : i32, i32
  }
  func.func @transform_1(%arg0: i32, %arg1: i32, %arg2: memref<4x9xi32, #tpu.memory_space<smem>>, %arg3: memref<18xi32, #tpu.memory_space<smem>>) -> (i32, i32) {
    %c0_i32 = arith.constant 0 : i32
    %c0_i32_0 = arith.constant 0 : i32
    return %arg0, %c0_i32 : i32, i32
  }
  func.func @transform_2(%arg0: i32, %arg1: i32, %arg2: memref<4x9xi32, #tpu.memory_space<smem>>, %arg3: memref<18xi32, #tpu.memory_space<smem>>) -> (i32, i32) {
    %c9_i32 = arith.constant 9 : i32
    %0 = arith.muli %arg0, %c9_i32 : i32
    %1 = arith.addi %0, %arg1 : i32
    %2 = arith.index_cast %1 : i32 to index
    %3 = memref.load %arg3[%2] : memref<18xi32, #tpu.memory_space<smem>>
    %c0_i32 = arith.constant 0 : i32
    %c0_i32_0 = arith.constant 0 : i32
    return %c0_i32, %3 : i32, i32
  }
  func.func @transform_3(%arg0: i32, %arg1: i32, %arg2: memref<4x9xi32, #tpu.memory_space<smem>>, %arg3: memref<18xi32, #tpu.memory_space<smem>>) -> (i32, i32) {
    %c9_i32 = arith.constant 9 : i32
    %0 = arith.muli %arg0, %c9_i32 : i32
    %1 = arith.addi %0, %arg1 : i32
    %2 = arith.index_cast %1 : i32 to index
    %3 = memref.load %arg3[%2] : memref<18xi32, #tpu.memory_space<smem>>
    %c0_i32 = arith.constant 0 : i32
    %c0_i32_0 = arith.constant 0 : i32
    return %c0_i32, %3 : i32, i32
  }
  func.func @transform_4(%arg0: i32, %arg1: i32, %arg2: memref<4x9xi32, #tpu.memory_space<smem>>, %arg3: memref<18xi32, #tpu.memory_space<smem>>) -> (i32, i32) {
    %c0_i32 = arith.constant 0 : i32
    %c0_i32_0 = arith.constant 0 : i32
    return %arg0, %c0_i32 : i32, i32
  }
}

</mosaic_0001>

<bundles_post_ra>
// kernel: tpu_custom_call.1
= control target key start
LH: loop header
LB: loop body
LE: loop exit
PB: predicated region body
PF: predicated region fallthrough
CT: control target
= control target key end

     0   :  { %s1293_s27 = smov [#allocation7]   ;;  %s1294_s28 = smov [#allocation8]   ;;  %s1665_s0 = inlined_call_operand.vmem [shape: s32[4,9], index: 0, kind: input, shape index: {}]   ;;  %s1666_s2 = inlined_call_operand.vmem [shape: bf16[64,128], index: 2, kind: input, shape index: {}]   ;;  %s1667_s3 = inlined_call_operand.vmem [shape: s32[64,4], index: 3, kind: input, shape index: {}]   ;;  %s1668_s4 = inlined_call_operand.hbm [shape: bf16[128,1152], index: 4, kind: input, shape index: {}]   ;;  %s1669_s5 = inlined_call_operand.vmem [shape: f32[1,1152], index: 5, kind: input, shape index: {}]   ;;  %s1670_s6 = inlined_call_operand.hbm [shape: f32[64,128], index: 6, kind: output, shape index: {}]   ;;  %s1671_s1 = inlined_call_operand.vmem [shape: s32[18], index: 1, kind: input, shape index: {}]  }
   0x1   :  { %1681 = sst [smem:[#allocation28_spill]] %s1668_s4  ;;  %s12_s23 = sshll.u32 %s1665_s0, 4  ;;  %s13_s23 = int_to_ptr.vmem [resolvable:$true] %s12_s23 }
   0x2   :  { %s17_s26 = sshll.u32 %s1671_s1, 4  ;;  %s18_s26 = int_to_ptr.vmem [resolvable:$true] %s17_s26 }
   0x3   :  { %15 = dma.vmem_to_smem %s13_s23, 64, %s1293_s27, [#allocation6] }
   0x4   :  { %20 = dma.vmem_to_smem %s18_s26, 16, %s1294_s28, [#allocation6] }
   0x5   :  { %1235 = dma.done.wait [#allocation6], 80 }
   0x6   :  { %1236 = vsyncadd [#allocation6], 4294967216 }
   0x7   :  { %23 = sfence }
   0x8   :  { %24 = vsyncpa [#allocation10], 0 }
   0x9   :  { %26 = vsyncpa [#allocation10 + $0x1], 0 }
   0xa   :  { %27 = vsyncpa [#allocation11], 0 }
   0xb   :  { %29 = vsyncpa [#allocation11 + $0x1], 0  ;;  %s1351_s29 = smov 0   ;;  %s1353_s0 = smov 0  }
   0xc   :  { %s1355_s30 = smov 0   ;;  %s1357_s1 = smov 0  }
   0xd   :  { %s1359_s7 = smov 0   ;;  %s1361_s8 = smov 0  }
   0xe   :  { %s1363_s9 = smov 0   ;;  %s1365_s10 = smov 0  }
   0xf   :  { %s1367_s11 = smov 0   ;;  %s1369_s12 = smov 0  }
  0x10   :  { %s1371_s13 = smov 0  }
  0x11 LB: > { %1682 = sst [smem:[#allocation18_spill]] %s1255_s30  ;;  %s871_s14 = sadd.s32 4294967295, %s1287_s13   ;;  %s1287_s13 = sphi %s1371_s13, %s35_s13   ;;  %s1283_s12 = sphi %s1369_s12, %s1708_s12   ;;  %s1279_s11 = sphi %s1367_s11, %s1707_s11   ;;  %s1275_s10 = sphi %s1365_s10, %s1706_s10   ;;  %s1271_s9 = sphi %s1363_s9, %s1705_s9   ;;  %s1267_s8 = sphi %s1361_s8, %s1704_s8   ;;  %s1263_s7 = sphi %s1359_s7, %s1703_s7   ;;  %s1259_s1 = sphi %s1357_s1, %s1702_s1   ;;  %s1255_s30 = sphi %s1355_s30, %s1701_s30   ;;  %s1251_s0 = sphi %s1353_s0, %s1710_s0   ;;  %s1247_s29 = sphi %s1351_s29, %s1709_s29  }
  0x12   : > { %1683 = sst [smem:[#allocation19_spill]] %s1263_s7  ;;  %s44_s15 = sadd.s32 1, %s1279_s11 }
  0x13   : > { %1684 = sst [smem:[#allocation20_spill]] %s1267_s8  ;;  %s47_s16 = sadd.s32 1, %s1283_s12 }
  0x14   : > { %1685 = sst [smem:[#allocation21_spill]] %s1279_s11  ;;  %p45_p0 = scmp.ge.s32.totalorder %s44_s15, 9 }
  0x15   : > { %1686 = sst [smem:[#allocation22_spill]] %s1283_s12  ;;  %s103_s17 = smul.u32 9, %s1283_s12 }
  0x16   : > { %s872_s18 = sadd.s32 4294967294, %s1287_s13   ;;  %s112_s19 = sadd.s32 1, %s1267_s8 }
  0x17   : > { %s1712_s15 = smov (%p45_p0, %s44_s15), 0  ;;  %s1714_s16 = smov (!%p45_p0, %s47_s16), %s1283_s12 }
  0x18   : > { %1687 = sst [smem:[#allocation23_spill]] %s1712_s15  ;;  %s1414_s20 = sadd.s32 %s1279_s11, %s103_s17 }
  0x19   : > { %p119_p1 = scmp.ne.s32.totalorder %s1267_s8, %s1263_s7  ;;  %p49_p2 = scmp.ge.s32.totalorder %s1714_s16, 2 }
  0x1a   : > { %p120_p3 = scmp.eq.s32.totalorder %s1287_s13, 0  ;;  %s105_s21 = sld [smem:[#allocation8 + %s1414_s20]] }
  0x1b   : > { %p125_p4 = scmp.ne.s32.totalorder %s1263_s7, %s1259_s1  ;;  %s1716_s16 = smov (%p49_p2, %s1714_s16), 0 }
  0x1c   : > { %1688 = sst [smem:[#allocation24_spill]] %s1716_s16  ;;  %p126_p5 = scmp.eq.s32.totalorder %s871_s14, 0 }
  0x1d   : > { %s170_s22 = sadd.s32 1, %s1255_s30  ;;  %s106_s23 = smul.u32 9, %s1716_s16 }
  0x1e   : > { %s167_s24 = ssub.s32 %s1283_s12, %s1716_s16  ;;  %p1427_p6 = por %p126_p5, %p125_p4 }
  0x1f   : > { %p168_p7 = scmp.eq.s32.totalorder %s167_s24, 0  ;;  %s107_s26 = sadd.s32 %s106_s23, %s1712_s15 }
  0x20   : > { %p180_p8 = scmp.ne.s32.totalorder %s1255_s30, %s1251_s0  ;;  %s108_s27 = sld [smem:[#allocation8 + %s107_s26]] }
  0x21   : > { %p181_p9 = scmp.eq.s32.totalorder %s871_s14, 17  ;;  %p186_p11 = scmp.ne.s32.totalorder %s1251_s0, %s1247_s29 }
  0x22   : > { %s1435_s28 = scalar_select %p168_p7, %s1255_s30, %s170_s22  }
  0x23   : > { %p1437_p10 = por %p181_p9, %p180_p8  ;;  %p187_p12 = scmp.eq.s32.totalorder %s872_s18, 17 }
  0x24   : > { %1690 = sst [smem:[#allocation25_spill]] %s1435_s28  ;;  %p121_p13 = por %p120_p3, %p119_p1 }
  0x25   : > { %s225_s17 = sand.u32 1, %s1267_s8   ;;  %p1449_p0 = por %p187_p12, %p186_p11 }
  0x26   : > { %p967_p2 = scmp.lt.s32.totalorder %s1287_s13, 18  ;;  %s109_s14 = ssub.s32 %s105_s21, %s108_s27 }
  0x27   : > { %s1692_s23 = scalar_select %p1449_p0, 1, 0 }
  0x28   : > { %s875_s22 = sshll.u32 %s225_s17, 6  ;;  %p110_p4 = scmp.eq.s32.totalorder %s109_s14, 0 }
  0x29   : > { %1693 = sst [smem:[#allocation26_spill]] %s1692_s23  ;;  %s1718_s20 = smov (!%p121_p13, %s1414_s20), 0 }
  0x2a   : > { %s951_s24 = scalar_select %p121_p13, [#allocation8], [#allocation13] }
  0x2b   : > { %s1457_s26 = scalar_select %p110_p4, %s1267_s8, %s112_s19  }
  0x2c   : > { %s1720_s24 = smov (!%p967_p2, %s951_s24), [#allocation14]  ;;  %s1722_s20 = smov (!%p967_p2, %s1718_s20), 0 }
  0x2d   : > { %1694 = sst [smem:[#allocation27_spill]] %s1457_s26  ;;  %p1460_p5 = pnand %p967_p2, %p121_p13 }
  0x2e   : > { %s232_s16 = sld [smem:[%s1720_s24 + %s1722_s20]]  ;;  %s229_s15 = scalar_lea.vmem [#allocation9], %s875_s22 }
  0x2f   : > { %s1464_s12 = sshll.u32 %s229_s15, 4  ;;  %p877_p1 = scmp.ge.s32.totalorder %s1287_s13, 1  ;;  %s240_s12 = int_to_ptr.vmem [resolvable:$true] %s1464_s12 }
  0x30   : > { %p259_p3 = scmp.lt.s32.totalorder %s1287_s13, 19  ;;  %s1697_s4 = sld [smem:[#allocation28_spill]] }
  0x31   : > { %s226_s20 = scalar_lea.sflag [#allocation10], %s225_s17  ;;  %p1133_p9 = pneg %p1460_p5 }
  0x32   : > { %p1469_p7 = pnand %p877_p1, %p259_p3 }
  0x34   : > { %s876_s19 = sshll.u32 %s232_s16, 2 }
  0x36   : > { %s236_s11 = scalar_lea.hbm %s1697_s4, %s876_s19  ;;  %s1136_s28 = scalar_lea.hbm %s1697_s4, 576 }
  0x37   : > { %s237_s26 = sshll.u32 %s236_s11, 4  ;;  %s238_s26 = int_to_ptr.hbm [resolvable:$true] %s237_s26 }
  0x38   : > { %s1129_s24 = sshra.s32 %s238_s26, 4  ;;  %s1130_s24 = int_to_ptr.hbm [resolvable:$true] %s1129_s24 }
  0x39   : > { %s1131_s15 = scalar_lea.hbm %s1130_s24, 64  ;;  %p1137_p13 = scmp.lt.s32.totalorder %s1130_s24, %s1697_s4 }
  0x3a   : > { %p1132_p8 = scmp.ne.s32.totalorder %s1130_s24, %s1131_s15  ;;  %p1138_p2 = scmp.lt.s32.totalorder %s1136_s28, %s1131_s15 }
  0x3c   : > { %p1134_p11 = pnand %p1133_p9, %p1132_p8  ;;  %p1139_p4 = por %p1138_p2, %p1137_p13 }
  0x3e   : > { %p1135_p12 = pneg %p1134_p11 }
  0x40   : > { %p1140_p1 = pnand %p1139_p4, %p1135_p12 }
  0x42   : > { %1143 = shalt.err (!%p1140_p1)
}
  0x43   : > { %s1295_s11 = smov 576   ;;  %s1296_s17 = smov 64  }
  0x44   : > { %s1297_s19 = smov 4   ;;  %263 = sbr.rel (%p1469_p7) target bundleno = 1076 (0x434), region = 36 }
  0x45   : > { %962 = dma.hbm_to_vmem [thread:$0]  (!%p1460_p5), %s238_s26, 1024, %s240_s12, %s226_s20, %s1295_s11, %s1296_s17, %s1297_s19  }
  0x46   : > { %s265_s8 = sand.u32 (!%p1469_p7), 1, %s1263_s7  }
  0x47   : > { %s878_s27 = sshll.u32 (!%p1469_p7), %s265_s8, 6  ;;  %s266_s14 = scalar_lea.sflag (!%p1469_p7), [#allocation10], %s265_s8 }
  0x48   : > { %s1489_s30 = scalar_lea.vmem (!%p1469_p7), [#allocation9], %s878_s27 }
  0x49   : > { %1238 = dma.done.wait (%p1427_p6), %s266_s14, 1024  }
  0x4a   : > { %1240 = vsyncadd (%p1427_p6), %s266_s14, 4294966272  ;;  %s326_s12 = smul.u32 9, %s1275_s10  ;;  %s337_s28 = sshra.s32 %s1271_s9, 7 }
  0x4b   : > { %s1498_s26 = sld [smem:[#allocation7 + %s1271_s9]]  ;;  %s935_s18 = sshll.u32 %s337_s28, 7 }
  0x4c   : > { %s327_s21 = sadd.s32 %s1271_s9, %s326_s12  ;;  %s936_s20 = sadd.s32 128, %s935_s18 }
  0x4d   : > { %s328_s24 = sld [smem:[#allocation8 + %s327_s21]]  ;;  %s342_s15 = sand.u32 127, %s1271_s9 }
  0x4e   : > { %s343_s22 = sadd.s32 %s936_s20, %s342_s15  ;;  %s938_s25 = sadd.s32 256, %s935_s18 }
  0x4f   : > { %s1502_s16 = sld [smem:[#allocation7 + %s343_s22]]  ;;  %s347_s11 = sadd.s32 %s938_s25, %s342_s15 }
  0x50   : > { %s1504_s17 = sld [smem:[#allocation7 + %s347_s11]]  ;;  %s940_s19 = sadd.s32 384, %s935_s18 }
  0x51   : > { %s351_s8 = sadd.s32 %s940_s19, %s342_s15  ;;  %s355_s27 = sld [smem:[#allocation8 + %s327_s21]] }
  0x52   : > { %s1506_s14 = sld [smem:[#allocation7 + %s351_s8]]  ;;  %s1679_s4 = sand.u32 1, %s1251_s0  }
  0x53   : > { %p329_p6 = scmp.lt.s32.totalorder %s328_s24, 8  ;;  %s879_s12 = sshll.u32 %s1679_s4, 5 }
  0x54   : > { %s880_s28 = sshll.u32 %s1275_s10, 2  ;;  %s1528_s23 = scalar_lea.vmem [#allocation12], %s879_s12 }
  0x55   : > { %s1724_s24 = smov (!%p329_p6, %s328_s24), 8  ;;  %p312_p5 = scmp.lt.s32.totalorder %s880_s28, 7 }
  0x56   : > { %s331_s25 = scalar_lea.vmem %s1669_s5, %s1724_s24  ;;  %p887_p3 = scmp.ne.s32.totalorder %s1271_s9, 0 }
  0x57   : > { %s1726_s28 = smov (!%p312_p5, %s880_s28), 7 }
  0x58   : > { %s881_s11 = sshll.u32 %s1726_s28, 2  ;;  %s883_s18 = sshll.u32 %s1726_s28, 3 }
  0x59   : > { %s1521_s19 = scalar_lea.vmem %s1666_s2, %s881_s11  ;;  %s1526_s4 = scalar_lea.vmem %s1667_s3, %s883_s18 }
  0x5a   : > { %360 = sbr.rel (%p887_p3) target bundleno = 100 (0x64), region = 44 }
  0x5f   : > { %vm361_vm0 = vcmask 7168   ;;  %v1298_v0 = vmov 0.0  }
  0x60   : > { %362 = vst.msk [vmem:[#allocation5] sm:$0xff] %vm361_vm0, %v1298_v0 }
  0x61   : > { %363 = vst.msk [vmem:[#allocation5 + $0x8] sm:$0xff] %vm361_vm0, %v1298_v0 }
  0x62   : > { %364 = vst.msk [vmem:[#allocation5 + $0x10] sm:$0xff] %vm361_vm0, %v1298_v0 }
  0x63   : > { %365 = vst.msk [vmem:[#allocation5 + $0x18] sm:$0xff] %vm361_vm0, %v1298_v0 }
  0x64 PF: > { %p888_p7 = scmp.ne.s32.totalorder %s355_s27, %s1271_s9 }
  0x65   : > { %p889_p8 = scmp.ne.s32.totalorder (!%p888_p7), %s1502_s16, 1 }
  0x66   : > { %368 = sbr.rel (%p888_p7) target bundleno = 926 (0x39e), region = 48 }
  0x6b   : > { %372 = sbr.rel (%p889_p8) target bundleno = 125 (0x7d), region = 52 }
  0x70   : > { %vm373_vm1 = vcmask 7168   ;;  %v1299_v1 = vmov -1e+30   ;;  %v1300_v2 = vmov 0.0  }
  0x71   : > { %374 = vst.msk [vmem:[#allocation2] sm:$0xff] %vm373_vm1, %v1299_v1 }
  0x72   : > { %375 = vst.msk [vmem:[#allocation2 + $0x8] sm:$0xff] %vm373_vm1, %v1299_v1 }
  0x73   : > { %376 = vst.msk [vmem:[#allocation2 + $0x10] sm:$0xff] %vm373_vm1, %v1299_v1 }
  0x74   : > { %377 = vst.msk [vmem:[#allocation2 + $0x18] sm:$0xff] %vm373_vm1, %v1299_v1 }
  0x75   : > { %378 = vst.msk [vmem:[#allocation3] sm:$0xff] %vm373_vm1, %v1300_v2 }
  0x76   : > { %379 = vst.msk [vmem:[#allocation3 + $0x8] sm:$0xff] %vm373_vm1, %v1300_v2 }
  0x77   : > { %380 = vst.msk [vmem:[#allocation3 + $0x10] sm:$0xff] %vm373_vm1, %v1300_v2 }
  0x78   : > { %381 = vst.msk [vmem:[#allocation3 + $0x18] sm:$0xff] %vm373_vm1, %v1300_v2 }
  0x79   : > { %382 = vst.msk [vmem:[#allocation4] sm:$0xff] %vm373_vm1, %v1300_v2 }
  0x7a   : > { %383 = vst.msk [vmem:[#allocation4 + $0x8] sm:$0xff] %vm373_vm1, %v1300_v2 }
  0x7b   : > { %384 = vst.msk [vmem:[#allocation4 + $0x10] sm:$0xff] %vm373_vm1, %v1300_v2 }
  0x7c   : > { %385 = vst.msk [vmem:[#allocation4 + $0x18] sm:$0xff] %vm373_vm1, %v1300_v2 }
  0x7d PF: > { %p386_p9 = scmp.eq.s32.totalorder %s1498_s26, 0  ;;  %s1536_s16 = smov 0  }
  0x7f   : > { %s1534_s7 = scalar_select %p386_p9, 1, 0 }
  0x80 LB: >> { %v949_v3 = vld [vmem:[%s1489_s30 + $0x38] sm:$0xff]  ;;  %v948_v4 = vld [vmem:[%s1489_s30 + $0x30] sm:$0xff]  ;;  %s1545_s12 = sshll.u32 %s1291_s16, 4  ;;  %v947_v8 = vld [vmem:[%s1489_s30 + $0x28] sm:$0xff]  ;;  %s1301_s20 = smov 126   ;;  %v558_v20 = vstv %s1506_s14  ;;  %v1303_v34 = vmov 1   ;;  %v567_v49 = vlaneseq  ;;  %s1291_s16 = sphi %s1536_s16, %s393_s16  }
  0x81   : >> { %s542_s27 = ssub.s32 1, %s1534_s7  ;;  %475 = vmatpush.bf16.msra.mxu0 %v949_v3  ;;  %s489_s28 = scalar_lea.vmem %s1526_s4, %s1545_s12  ;;  %v946_v10 = vld [vmem:[%s1489_s30 + $0x20] sm:$0xff]  ;;  %v945_v12 = vld [vmem:[%s1489_s30 + $0x18] sm:$0xff]  ;;  %v944_v13 = vld [vmem:[%s1489_s30 + $0x10] sm:$0xff]  ;;  %v1560_v17 = vstv %s1534_s7  ;;  %1084 = vset.pattern.permute.xlu2 %v1303_v34  ;;  %v1304_v40 = vmov 0   ;;  %vm534_vm4 = vcmask 7168  }
  0x82   : >> { %v543_v5 = vstv %s542_s27  ;;  %v490_v6 = vld [vmem:[%s489_s28] sm:$0xff]  ;;  %v491_v9 = vld [vmem:[%s489_s28 + $0x8] sm:$0xff]  ;;  %s395_s22 = sshra.s32 %s1545_s12, 3  ;;  %s1302_s15 = smov 1   ;;  %1082 = vset.pattern.permute.xlu0 %v1304_v40  ;;  %1083 = vset.pattern.permute.xlu1 %v1304_v40  ;;  %v568_v50 = vand.u32 127, %v567_v49 }
  0x83   : >> { %v544_v7 = vmul.u32 %v543_v5, %v490_v6  ;;  %v545_v11 = vmul.u32 %v543_v5, %v491_v9  ;;  %v943_v14 = vld [vmem:[%s1489_s30 + $0x8] sm:$0xff]  ;;  %s891_s11 = sshll.u32 %s395_s22, 2  ;;  %v942_v15 = vld [vmem:[%s1489_s30] sm:$0xff]  ;;  %v540_v18 = vmul.u32 %v1560_v17, %v490_v6  ;;  %v541_v23 = vmul.u32 %v1560_v17, %v491_v9  ;;  %s552_s21 = smul.u32 %s542_s27, %s1498_s26 }
  0x84   : >> { %s398_s18 = scalar_lea.vmem %s1521_s19, %s891_s11  ;;  %v1086_v29 = vld [vmem:[%s331_s25] ss:$0 sm:$0xff]  ;;  %s492_s27 = scalar_lea.vmem [#allocation2], %s1545_s12 }
  0x85   : >> { %476 = vmatpush.bf16.msra.mxu0 %v948_v4  ;;  %546 = vrot.lane.b32.xlu0 %v544_v7, %s1301_s20  ;;  %v941_v16 = vld [vmem:[%s398_s18] sm:$0xff]  ;;  %v1568_v27 = vstv %s552_s21  ;;  %v494_v45 = vld [vmem:[%s492_s27 + $0x8] sm:$0xff]  ;;  %s501_s22 = scalar_lea.vmem [#allocation3], %s1545_s12  ;;  %s393_s16 = sadd.s32 1, %s1291_s16  }
  0x86   : >> { %v554_v28 = vadd.s32 %v1568_v27, %v540_v18  ;;  %v555_v35 = vadd.s32 %v1568_v27, %v541_v23  ;;  %v493_v41 = vld [vmem:[%s492_s27] sm:$0xff]  ;;  %p390_p11 = scmp.ge.s32.totalorder %s393_s16, 2  }
  0x87   : >> { %v502_v5 = vld [vmem:[%s501_s22] sm:$0xff]  ;;  %p928_p12 = scmp.ne.s32.totalorder (%p390_p11), %s1504_s17, 1 }
  0x88   : >> { %vm556_vm2 = vcmp.eq.s32.totalorder %v490_v6, %v554_v28  ;;  %vm557_vm3 = vcmp.eq.s32.totalorder %v491_v9, %v555_v35 }
  0x89   : >> { %477 = vmatpush.bf16.msra.mxu0 %v947_v8 }
  0x8d   : >> { %478 = vmatpush.bf16.msra.mxu0 %v946_v10  ;;  %548 = vrot.lane.b32.xlu0 %v545_v11, %s1301_s20  ;;  %s569_s20 = scalar_lea.vmem [#allocation4], %s1545_s12  ;;  %v503_v10 = vld [vmem:[%s501_s22 + $0x8] sm:$0xff] }
  0x8e   : >> { %v570_v63 = vld [vmem:[%s569_s20] sm:$0xff] }
  0x91   : >> { %479 = vmatpush.bf16.msra.mxu0 %v945_v12 }
  0x95   : >> { %480 = vmatpush.bf16.msra.mxu0 %v944_v13 }
  0x99   : >> { %481 = vmatpush.bf16.msra.mxu0 %v943_v14  ;;  %v571_v14 = vld [vmem:[%s569_s20 + $0x8] sm:$0xff] }
  0x9d   : >> { %482 = vmatpush.bf16.msra.mxu0 %v942_v15 }
  0xa0   : >> { %483 = vmatmul.bf16.vlgmr.msra.gmra.mxu0 %v941_v16 }
  0xf7   : >> { %v547_v19 = vpop.permute.xlu0 %546 }
  0xf8   : >> { %v550_v21 = vadd.s32 %v547_v19, %v540_v18 }
  0xfa   : >> { %v559_v22 = vsub.s32 %v550_v21, %v558_v20 }
  0xfc   : >> { %561 = vrot.lane.b32.xlu2 %v559_v22, %s1302_s15 }
  0xff   : >> { %v549_v24 = vpop.permute.xlu0 %548 }
 0x100   : >> { %v551_v25 = vadd.s32 %v549_v24, %v541_v23 }
 0x102   : >> { %v560_v26 = vsub.s32 %v551_v25, %v558_v20 }
 0x104   : >> { %563 = vrot.lane.b32.xlu2 %v560_v26, %s1302_s15 }
 0x11d   : >> { %v484_v30 = vpop.f32.mrf.mxu0 }
 0x11e   : >> { %v485_v31 = vadd.f32 %v1086_v29, %v484_v30 }
 0x120   : >> { %495 = vmax.xlane.f32.xlu1 %v485_v31 }
 0x125   : >> { %v486_v32 = vpop.f32.mrf.mxu0 }
 0x126   : >> { %v487_v33 = vadd.f32 %v1086_v29, %v486_v32 }
 0x128   : >> { %497 = vmax.xlane.f32.xlu1 %v487_v33 }
 0x156   : >> { %v562_v36 = vpop.permute.xlu2 %561 }
 0x157   : >> { %v565_v37 = vsel %vm556_vm2, %v562_v36, 4294967295 }
 0x158   : >> { %573 = vperm.xlu2 %1084, %v565_v37  }
 0x15e   : >> { %v564_v38 = vpop.permute.xlu2 %563 }
 0x15f   : >> { %v566_v39 = vsel %vm557_vm3, %v564_v38, 4294967295 }
 0x160   : >> { %576 = vperm.xlu2 %1084, %v566_v39  }
 0x193   : >> { %v496_v42 = vpop.xlane.xlu1 %495 }
 0x194   : >> { %v499_v43 = vmax.f32 %v493_v41, %v496_v42 }
 0x196   : >> { %v504_v44 = vsub.f32 %v493_v41, %v499_v43  ;;  %537 = vst.msk [vmem:[%s492_s27] sm:$0xff] %vm534_vm4, %v499_v43  ;;  %514 = vperm.xlu0 %1082, %v499_v43  }
 0x198   : >> { %v506_v2 = vmul.f32 1.442695, %v504_v44 }
 0x19b   : >> { %v498_v46 = vpop.xlane.xlu1 %497 }
 0x19c   : >> { %v500_v47 = vmax.f32 %v494_v45, %v498_v46 }
 0x19e   : >> { %v505_v48 = vsub.f32 %v494_v45, %v500_v47  ;;  %538 = vst.msk [vmem:[%s492_s27 + $0x8] sm:$0xff] %vm534_vm4, %v500_v47  ;;  %519 = vperm.xlu1 %1083, %v500_v47   ;;  %1085 = vset.pattern.permute.xlu0 %v1303_v34 }
 0x1a0   : >> { %v508_v3 = vmul.f32 1.442695, %v505_v48 }
 0x1b2   : >> { %v574_v51 = vpop.permute.xlu2 %573 }
 0x1b3   : >> { %vm578_vm5 = vcmp.eq.s32.totalorder %v568_v50, %v574_v51 }
 0x1b4   : >> { %v580_v52 = vsel %vm578_vm5, %v485_v31, 0.0 }
 0x1ba   : >> { %v577_v61 = vpop.permute.xlu2 %576 }
 0x1bb   : >> { %vm579_vm6 = vcmp.eq.s32.totalorder %v568_v50, %v577_v61 }
 0x1bc   : >> { %v581_v62 = vsel %vm579_vm6, %v487_v33, 0.0 }
 0x1c8   : >> { %582 = vadd.xlane.f32.xlu1 %v580_v52 }
 0x208   : >> { %v515_v53 = vpop.permute.xlu0 %514 }
 0x209   : >> { %v522_v54 = vsub.f32 %v485_v31, %v515_v53 }
 0x20b   : >> { %v524_v55 = vmul.f32 1.442695, %v522_v54 }
 0x20d   : >> { %1087 = vpow2.f32 %v524_v55 }
 0x210   : >> { %v520_v56 = vpop.permute.xlu1 %519 }
 0x211   : >> { %v523_v57 = vsub.f32 %v487_v33, %v520_v56 }
 0x213   : >> { %v1088_v58 = vpop.eup %1087  ;;  %v526_v59 = vmul.f32 1.442695, %v523_v57 }
 0x214   : >> { %528 = vadd.xlane.f32.xlu0 %v1088_v58 }
 0x215   : >> { %1089 = vpow2.f32 %v526_v59 }
 0x216   : >> { %1091 = vpow2.f32 %v506_v2 }
 0x217   : >> { %1093 = vpow2.f32 %v508_v3 }
 0x21b   : >> { %v1090_v60 = vpop.eup %1089 }
 0x21c   : >> { %530 = vadd.xlane.f32.xlu2 %v1090_v60  ;;  %v1092_v4 = vpop.eup %1091 }
 0x21d   : >> { %v510_v6 = vmul.f32 %v1092_v4, %v502_v5  ;;  %v1094_v9 = vpop.eup %1093 }
 0x21e   : >> { %v511_v11 = vmul.f32 %v1094_v9, %v503_v10 }
 0x224   : >> { %584 = vadd.xlane.f32.xlu2 %v581_v62 }
 0x23b   : >> { %v583_v0 = vpop.xlane.xlu1 %582 }
 0x23c   : >> { %v586_v1 = vadd.f32 %v583_v0, %v570_v63 }
 0x23e   : >> { %588 = vst.msk [vmem:[%s569_s20] sm:$0xff] %vm534_vm4, %v586_v1 }
 0x287   : >> { %v529_v7 = vpop.xlane.xlu0 %528 }
 0x288   : >> { %v532_v8 = vadd.f32 %v529_v7, %v510_v6 }
 0x28a   : >> { %535 = vst.msk [vmem:[%s501_s22] sm:$0xff] %vm534_vm4, %v532_v8 }
 0x28f   : >> { %v531_v12 = vpop.xlane.xlu2 %530 }
 0x290   : >> { %v533_v13 = vadd.f32 %v531_v12, %v511_v11 }
 0x292   : >> { %536 = vst.msk [vmem:[%s501_s22 + $0x8] sm:$0xff] %vm534_vm4, %v533_v13 }
 0x296   : > { %392 = sbr.rel (!%p390_p11) target bundleno = 128 (0x80), region = 122 }
 0x297   : >> { %v585_v15 = vpop.xlane.xlu2 %584 }
 0x298   : >> { %v587_v16 = vadd.f32 %v585_v15, %v571_v14 }
 0x29a   : >> { %589 = vst.msk [vmem:[%s569_s20 + $0x8] sm:$0xff] %vm534_vm4, %v587_v16 }
 0x29b   : > { %593 = sbr.rel (%p928_p12) target bundleno = 926 (0x39e), region = 63  ;;  %s1305_s30 = smov (!%p928_p12), 1  }
 0x29c   : > { %s1306_s26 = smov (!%p928_p12), 127  }
 0x2a0   : > { %v628_v18 = vld [vmem:[#allocation3 + $0x10] sm:$0xff]  ;;  %v629_v19 = vld [vmem:[#allocation3 + $0x18] sm:$0xff]  ;;  %v626_v20 = vld [vmem:[#allocation3] sm:$0xff] }
 0x2a1   : > { %1095 = vlog2.f32 %v628_v18  ;;  %v616_v21 = vld [vmem:[#allocation4 + $0x10] sm:$0xff]  ;;  %v627_v23 = vld [vmem:[#allocation3 + $0x8] sm:$0xff]  ;;  %v614_v24 = vld [vmem:[#allocation4] sm:$0xff] }
 0x2a2   : > { %1097 = vlog2.f32 %v629_v19  ;;  %v620_v22 = vld [vmem:[#allocation2 + $0x10] sm:$0xff]  ;;  %v618_v25 = vld [vmem:[#allocation2] sm:$0xff]  ;;  %v617_v33 = vld [vmem:[#allocation4 + $0x18] sm:$0xff] }
 0x2a3   : > { %1099 = vlog2.f32 %v626_v20  ;;  %v624_v26 = vsub.f32 %v616_v21, %v620_v22  ;;  %v622_v31 = vsub.f32 %v614_v24, %v618_v25  ;;  %v621_v34 = vld [vmem:[#allocation2 + $0x18] sm:$0xff]  ;;  %v615_v38 = vld [vmem:[#allocation4 + $0x8] sm:$0xff]  ;;  %v596_v47 = vld [vmem:[%s1526_s4 + $0x10] sm:$0xff] }
 0x2a4   : > { %1101 = vlog2.f32 %v627_v23  ;;  %v619_v39 = vld [vmem:[#allocation2 + $0x8] sm:$0xff]  ;;  %v625_v40 = vsub.f32 %v617_v33, %v621_v34  ;;  %v594_v48 = vld [vmem:[%s1526_s4] sm:$0xff]  ;;  %v603_v49 = vmul.u32 %v596_v47, %v1560_v17  ;;  %v597_v52 = vld [vmem:[%s1526_s4 + $0x18] sm:$0xff] }
 0x2a5   : > { %v623_v43 = vsub.f32 %v615_v38, %v619_v39  ;;  %v601_v50 = vmul.u32 %v594_v48, %v1560_v17  ;;  %v595_v54 = vld [vmem:[%s1526_s4 + $0x8] sm:$0xff]  ;;  %v604_v55 = vmul.u32 %v597_v52, %v1560_v17  ;;  %v642_v3 = vld [vmem:[#allocation5] sm:$0xff]  ;;  %v644_v8 = vld [vmem:[#allocation5 + $0x10] sm:$0xff] }
 0x2a6   : > { %v608_v51 = vadd.s32 %v603_v49, %v1568_v27  ;;  %v602_v57 = vmul.u32 %v595_v54, %v1560_v17  ;;  %v643_v5 = vld [vmem:[#allocation5 + $0x8] sm:$0xff]  ;;  %v645_v10 = vld [vmem:[#allocation5 + $0x18] sm:$0xff] }
 0x2a7   : > { %v1096_v28 = vpop.eup %1095  ;;  %v606_v53 = vadd.s32 %v601_v50, %v1568_v27  ;;  %v609_v59 = vadd.s32 %v604_v55, %v1568_v27 }
 0x2a8   : > { %v1098_v29 = vpop.eup %1097  ;;  %v635_v30 = vmul.f32 0.6931472, %v1096_v28  ;;  %vm612_vm7 = vcmp.eq.s32.totalorder %v596_v47, %v608_v51  ;;  %v607_v62 = vadd.s32 %v602_v57, %v1568_v27 }
 0x2a9   : > { %v1100_v32 = vpop.eup %1099  ;;  %v637_v41 = vmul.f32 0.6931472, %v1098_v29  ;;  %vm610_vm8 = vcmp.eq.s32.totalorder %v594_v48, %v606_v53  ;;  %vm613_vm9 = vcmp.eq.s32.totalorder %v597_v52, %v609_v59 }
 0x2aa   : > { %v640_v35 = vsub.f32 %v624_v26, %v635_v30  ;;  %v631_v36 = vmul.f32 0.6931472, %v1100_v32  ;;  %v1102_v37 = vpop.eup %1101  ;;  %vm611_vm10 = vcmp.eq.s32.totalorder %v595_v54, %v607_v62 }
 0x2ab   : > { %v633_v44 = vmul.f32 0.6931472, %v1102_v37  ;;  %v641_v45 = vsub.f32 %v625_v40, %v637_v41 }
 0x2ac   : > { %654 = vrot.lane.b32.xlu1 %v640_v35, %s1305_s30  ;;  %v638_v42 = vsub.f32 %v622_v31, %v631_v36 }
 0x2ad   : > { %v639_v46 = vsub.f32 %v623_v43, %v633_v44 }
 0x2ae   : > { %650 = vrot.lane.b32.xlu0 %v638_v42, %s1305_s30 }
 0x2b4   : > { %656 = vrot.lane.b32.xlu1 %v641_v45, %s1305_s30 }
 0x2b6   : > { %652 = vrot.lane.b32.xlu0 %v639_v46, %s1305_s30 }
 0x31e   : > { %v655_v56 = vpop.permute.xlu1 %654 }
 0x31f   : > { %v664_v58 = vsel %vm612_vm7, %v655_v56, 0.0 }
 0x320   : > { %674 = vrot.lane.b32.xlu0 %v664_v58, %s1306_s26  ;;  %v651_v60 = vpop.permute.xlu0 %650 }
 0x321   : > { %v662_v61 = vsel %vm610_vm8, %v651_v60, 0.0 }
 0x322   : > { %670 = vrot.lane.b32.xlu2 %v662_v61, %s1306_s26 }
 0x326   : > { %v657_v63 = vpop.permute.xlu1 %656 }
 0x327   : > { %v665_v0 = vsel %vm613_vm9, %v657_v63, 0.0 }
 0x328   : > { %676 = vrot.lane.b32.xlu1 %v665_v0, %s1306_s26  ;;  %v653_v1 = vpop.permute.xlu0 %652 }
 0x329   : > { %v663_v2 = vsel %vm611_vm10, %v653_v1, 0.0 }
 0x32a   : > { %672 = vrot.lane.b32.xlu2 %v663_v2, %s1306_s26 }
 0x37c   : > { %v671_v17 = vpop.permute.xlu2 %670 }
 0x37d   : > { %v682_v4 = vsub.f32 %v642_v3, %v671_v17 }
 0x37f   : > { %687 = vst.msk [vmem:[#allocation5] sm:$0xff] %vm534_vm4, %v682_v4 }
 0x384   : > { %v673_v6 = vpop.permute.xlu2 %672 }
 0x385   : > { %v683_v7 = vsub.f32 %v643_v5, %v673_v6 }
 0x387   : > { %688 = vst.msk [vmem:[#allocation5 + $0x8] sm:$0xff] %vm534_vm4, %v683_v7 }
 0x392   : > { %v675_v27 = vpop.permute.xlu0 %674 }
 0x393   : > { %v684_v9 = vsub.f32 %v644_v8, %v675_v27 }
 0x395   : > { %689 = vst.msk [vmem:[#allocation5 + $0x10] sm:$0xff] %vm534_vm4, %v684_v9 }
 0x39a   : > { %v677_v11 = vpop.permute.xlu1 %676 }
 0x39b   : > { %v685_v12 = vsub.f32 %v645_v10, %v677_v11 }
 0x39d   : > { %690 = vst.msk [vmem:[#allocation5 + $0x18] sm:$0xff] %vm534_vm4, %v685_v12 }
 0x39e PF: > { %p929_p13 = scmp.ne.s32.totalorder %s1271_s9, 8 }
 0x3a0   : > { %694 = sbr.rel (%p929_p13) target bundleno = 1060 (0x424), region = 67 }
 0x3a5   : > { %v697_v13 = vld [vmem:[#allocation5 + $0x10] sm:$0xff]  ;;  %v695_v14 = vld [vmem:[#allocation5] sm:$0xff]  ;;  %v1307_v15 = vmov 0   ;;  %v698_v16 = vld [vmem:[#allocation5 + $0x18] sm:$0xff] }
 0x3a6   : > { %1104 = vset.pattern.permute.xlu1 %v1307_v15  ;;  %1103 = vset.pattern.permute.xlu0 %v1307_v15  ;;  %v696_v18 = vld [vmem:[#allocation5 + $0x8] sm:$0xff] }
 0x3a7   : > { %711 = vperm.xlu1 %1104, %v697_v13   ;;  %701 = vperm.xlu0 %1103, %v695_v14  }
 0x3af   : > { %716 = vperm.xlu1 %1104, %v698_v16   ;;  %706 = vperm.xlu0 %1103, %v696_v18  }
 0x419   : > { %v712_v19 = vpop.permute.xlu1 %711  ;;  %v702_v20 = vpop.permute.xlu0 %701 }
 0x41a   : > { %721 = vst [vmem:[%s1528_s23 + $0x10] sm:$0xff] %v712_v19 }
 0x41b   : > { %719 = vst [vmem:[%s1528_s23] sm:$0xff] %v702_v20 }
 0x421   : > { %v717_v21 = vpop.permute.xlu1 %716  ;;  %v707_v22 = vpop.permute.xlu0 %706 }
 0x422   : > { %722 = vst [vmem:[%s1528_s23 + $0x18] sm:$0xff] %v717_v21 }
 0x423   : > { %720 = vst [vmem:[%s1528_s23 + $0x8] sm:$0xff] %v707_v22 }
 0x424 PF: > { %s950_s4 = sshll.u32 %s1275_s10, 5  ;;  %s736_s14 = sshll.u32 %s1528_s23, 4  ;;  %s737_s14 = int_to_ptr.vmem [resolvable:$true] %s736_s14 }
 0x425   : > { %s735_s17 = scalar_lea.hbm %s1670_s6, %s950_s4  ;;  %s1698_s19 = sand.u32 1, %s1251_s0  }
 0x426   : > { %s738_s25 = sshll.u32 %s735_s17, 4  ;;  %s724_s7 = scalar_lea.sflag [#allocation11], %s1698_s19  ;;  %s739_s25 = int_to_ptr.hbm [resolvable:$true] %s738_s25 }
 0x427   : > { %s1173_s16 = sshra.s32 %s739_s25, 4  ;;  %s1179_s10 = scalar_lea.hbm %s1670_s6, 64  ;;  %s1174_s16 = int_to_ptr.hbm [resolvable:$true] %s1173_s16 }
 0x428   : > { %s1175_s12 = scalar_lea.hbm %s1174_s16, 32  ;;  %p1180_p6 = scmp.lt.s32.totalorder %s1174_s16, %s1670_s6 }
 0x429   : > { %p1176_p2 = scmp.ne.s32.totalorder %s1174_s16, %s1175_s12  ;;  %p1181_p5 = scmp.lt.s32.totalorder %s1179_s10, %s1175_s12 }
 0x42b   : > { %p1177_p4 = pnand %p1176_p2, %p1437_p10  ;;  %p1182_p3 = por %p1181_p5, %p1180_p6 }
 0x42d   : > { %p1178_p1 = pneg %p1177_p4 }
 0x42f   : > { %p1183_p7 = pnand %p1182_p3, %p1178_p1 }
 0x431   : > { %1186 = shalt.err (!%p1183_p7)
}
 0x432   : > { %s1308_s23 = smov 128   ;;  %s1309_s8 = smov 8  }
 0x433   : > { %955 = dma.vmem_to_hbm [thread:$0]  (%p1437_p10), %s737_s14, 512, %s739_s25, %s724_s7, %s1308_s23, %s1308_s23, %s1309_s8  }
 0x434 PF: > { %p968_p8 = scmp.ge.s32.totalorder %s1287_s13, 2  ;;  %s753_s27 = sand.u32 1, %s1247_s29  }
 0x435   : > { %s754_s20 = scalar_lea.sflag [#allocation11], %s753_s27 }
 0x436   : > { %p964_p9 = pnand %p968_p8, %p1449_p0 }
 0x438   : > { %p965_p11 = pneg %p964_p9 }
 0x43a   : > { %1242 = dma.done.wait (%p965_p11), %s754_s20, 512  }
 0x43b   : > { %1244 = vsyncadd (%p965_p11), %s754_s20, 4294966784  ;;  %s35_s13 = sadd.s32 1, %s1287_s13   ;;  %s1700_s22 = sld [smem:[#allocation18_spill]] }
 0x43c   : > { %p32_p12 = scmp.ge.s32.totalorder %s35_s13, 20   ;;  %s1701_s30 = sld [smem:[#allocation25_spill]] }
 0x43d   : > { %s1702_s1 = sld [smem:[#allocation19_spill]]  ;;  %s1709_s29 = smov %s1251_s0 }
 0x43e   : > { %s1703_s7 = sld [smem:[#allocation20_spill]] }
 0x43f   : > { %s1704_s8 = sld [smem:[#allocation27_spill]]  ;;  %34 = sbr.rel (!%p32_p12) target bundleno = 17 (0x11), region = 133 }
 0x440   : > { %s1705_s9 = sld [smem:[#allocation21_spill]] }
 0x441   : > { %s1706_s10 = sld [smem:[#allocation22_spill]]  ;;  %s1710_s0 = smov %s1700_s22 }
 0x442   : > { %s1707_s11 = sld [smem:[#allocation23_spill]] }
 0x443   : > { %s1708_s12 = sld [smem:[#allocation24_spill]] }
 0x444   :  { %760 = vsyncpa [#allocation10], 1 }
 0x445   :  { %762 = vsyncpa [#allocation10 + $0x1], 1 }
 0x446   :  { %763 = vsyncpa [#allocation11], 1 }
 0x447   :  { %765 = vsyncpa [#allocation11 + $0x1], 1 }

</bundles_post_ra>
